<compile_context>
chip_gen: v6e
topology: v6e:2x2x1
jax: 0.10.0
libtpu: 0.0.40
codegen_flags: <defaults>
</compile_context>

<pallas_src>
import jax
import jax.numpy as jnp
from jax.experimental import pallas as pl
from jax.experimental.pallas import tpu as pltpu


def _round_up(x, m):
    return ((x + m - 1) // m) * m


# ---------------------------------------------------------------------------
# Path 1: HBM-streaming gather (reads all R*V log-probs; small / medium V).
# ---------------------------------------------------------------------------
def _stream_gather_kernel(inp_ref, tgt_ref, out_ref, acc_ref):
    """acc[r, lane] <- input[r, target[r]] when the matching vocab tile streams by."""
    j = pl.program_id(1)                      # vocab (reduction) axis, innermost
    tr, tv = inp_ref.shape

    @pl.when(j == 0)
    def _():
        acc_ref[...] = jnp.zeros_like(acc_ref)

    # rel[r, lane] == c*128  <=>  global column j*TV + c*128 + lane == target[r].
    lane = jax.lax.broadcasted_iota(jnp.int32, (tr, 128), 1)
    rel = (tgt_ref[...] - j * tv) - lane                          # (TR, 128) int32
    for c in range(tv // 128):                                    # static, lane-aligned
        chunk = inp_ref[:, c * 128:(c + 1) * 128].astype(jnp.float32)
        acc_ref[...] = jnp.where(rel == c * 128, chunk, acc_ref[...])

    @pl.when(j == pl.num_programs(1) - 1)
    def _():
        # Single cross-lane reduce + lane-sparse store, only in the finalize step.
        out_ref[...] = jnp.sum(acc_ref[...], axis=1, keepdims=True)


def _gather_rows_streaming(inp2, tgt2, *, tr, tv, input_buffer_count=None):
    R, V = inp2.shape
    grid = (pl.cdiv(R, tr), pl.cdiv(V, tv))
    itemsize = jnp.dtype(inp2.dtype).itemsize

    bufs = input_buffer_count if input_buffer_count is not None else 2
    need = bufs * tr * tv * itemsize + tr * 128 * 4 + (1 << 20)
    vmem_limit = int(min(max(need, 32 * 1024 * 1024), 64 * 1024 * 1024))

    spec_kwargs = {}
    if input_buffer_count is not None:        # optional sweep knob (e.g. Buffered(3) on v7x)
        spec_kwargs["pipeline_mode"] = pl.Buffered(input_buffer_count)
    inp_spec = pl.BlockSpec((tr, tv), lambda i, j: (i, j), **spec_kwargs)

    return pl.pallas_call(
        _stream_gather_kernel,
        out_shape=jax.ShapeDtypeStruct((R, 1), jnp.float32),
        grid=grid,
        in_specs=[
            inp_spec,                                        # streamed log-probs
            pl.BlockSpec((tr, 1), lambda i, j: (i, 0)),      # per-row targets
        ],
        out_specs=pl.BlockSpec((tr, 1), lambda i, j: (i, 0)),
        scratch_shapes=[pltpu.VMEM((tr, 128), jnp.float32)],  # lane-dense accumulator
        compiler_params=pltpu.CompilerParams(
            dimension_semantics=("parallel", "arbitrary"),
            vmem_limit_bytes=vmem_limit,
        ),
        cost_estimate=pl.CostEstimate(
            flops=2 * R * V,
            transcendentals=0,
            bytes_accessed=R * V * itemsize + 3 * R * 4,
        ),
    )(inp2, tgt2)


# ---------------------------------------------------------------------------
# Path 2: data-dependent DMA gather (reads only 128 lanes per row; LLM-sized V).
# ---------------------------------------------------------------------------
def _dma_gather_kernel(start_sm, inp_hbm, local_ref, out_ref, buf, sem):
    i = pl.program_id(0)
    tr, lanes = buf.shape
    n_rows = inp_hbm.shape[0]

    def _issue(r, carry):
        row = jnp.minimum(i * tr + r, n_rows - 1)       # clamp for the last partial tile
        col = start_sm[row]                             # start column holding target[row]
        pltpu.make_async_copy(
            inp_hbm.at[pl.ds(row, 1), pl.ds(col, lanes)],
            buf.at[pl.ds(r, 1)],
            sem,
        ).start()
        return carry

    jax.lax.fori_loop(0, tr, _issue, 0)

    def _drain(r, carry):
        # Fresh same-shape descriptor just to consume one completion from `sem`.
        pltpu.make_async_copy(
            inp_hbm.at[pl.ds(0, 1), pl.ds(0, lanes)],
            buf.at[pl.ds(r, 1)],
            sem,
        ).wait()
        return carry

    jax.lax.fori_loop(0, tr, _drain, 0)

    lane = jax.lax.broadcasted_iota(jnp.int32, (tr, lanes), 1)
    sel = jnp.where(lane == local_ref[...], buf[...].astype(jnp.float32), 0.0)
    out_ref[...] = jnp.sum(sel, axis=1, keepdims=True)


def _gather_rows_dma(inp2, tgt_flat, *, tr):
    R, V = inp2.shape
    L = 128
    # 128-wide window containing target[r]; clamped so the window stays in-bounds.
    start = jnp.clip((tgt_flat // L) * L, 0, V - L).astype(jnp.int32)     # (R,)
    local = (tgt_flat.astype(jnp.int32) - start).reshape(R, 1)            # (R, 1)

    grid_spec = pltpu.PrefetchScalarGridSpec(
        num_scalar_prefetch=1,
        grid=(pl.cdiv(R, tr),),
        in_specs=[
            pl.BlockSpec(memory_space=pl.ANY),               # log-probs stay in HBM
            pl.BlockSpec((tr, 1), lambda i, s: (i, 0)),      # local lane of each target
        ],
        out_specs=pl.BlockSpec((tr, 1), lambda i, s: (i, 0)),
        scratch_shapes=[
            pltpu.VMEM((tr, L), inp2.dtype),
            pltpu.SemaphoreType.DMA,
        ],
    )
    # TODO(synk): double-buffer the per-row DMA gathers across row tiles so the next
    # tile's copies overlap this tile's compare/reduce.
    return pl.pallas_call(
        _dma_gather_kernel,
        out_shape=jax.ShapeDtypeStruct((R, 1), jnp.float32),
        grid_spec=grid_spec,
        compiler_params=pltpu.CompilerParams(
            dimension_semantics=("arbitrary",)),
    )(start, inp2, local)


# ---------------------------------------------------------------------------
# Public wrapper (mirrors LanguageModelCriterion.forward)
# ---------------------------------------------------------------------------
def language_model_criterion(inp, target, *, tr_max=512, tv_max=4096,
                             gather_threshold=8192, use_gather=None,
                             input_buffer_count=None):
    """inp: (B, T, V) float log-probs; target: (B, T_tgt) int. Returns scalar loss."""
    B, T, V = inp.shape
    target = target[:, :T].astype(jnp.int32)                 # target[:, :input.size(1)]

    # PyTorch mask: mask[b, :num_non_zeros[b] + 1] = 1 (clamped to T). Tiny -> JAX.
    counts = jnp.sum((target > 0).astype(jnp.int32), axis=1, keepdims=True)
    col = jnp.arange(T, dtype=jnp.int32)[None, :]
    mask = (col <= counts).astype(jnp.float32)                # (B, T)

    R = B * T
    inp2 = inp.reshape(R, V)
    tgt_flat = target.reshape(R)

    # Corner-case pad only (negligible): keep blocks within array bounds when the
    # whole problem is smaller than a single minimum (8, 128) tile.  Realistic
    # shapes (V >= 128, B*T >= 8) are never padded -- partial edge blocks handle
    # non-divisible sizes, which removes the extra full HBM pass jnp.pad caused.
    R_work, V_work = R, V
    if V < 128 or R < 8:
        V_work = max(V, 128)
        R_work = max(R, 8)
        inp2 = jnp.pad(inp2, ((0, R_work - R), (0, V_work - V)))
        tgt_flat = jnp.pad(tgt_flat, (0, R_work - R), constant_values=-1)

    # Row tile: sublane-aligned; split so >= 2 row tiles exist (both v7x TCs get work).
    TR = max(8, _round_up(min(tr_max, _round_up(R_work, 8)), 8))
    if R_work > 8 and pl.cdiv(R_work, TR) < 2:
        TR = max(8, _round_up(pl.cdiv(R_work, 2), 8))

    if use_gather is None:
        use_gather = V_work >= max(gather_threshold, 128)

    if use_gather and V_work >= 128:
        gathered = _gather_rows_dma(inp2, tgt_flat, tr=TR)
    else:
        TV = max(128, min(_round_up(tv_max, 128), _round_up(V_work, 128)))
        gathered = _gather_rows_streaming(
            inp2, tgt_flat.reshape(R_work, 1), tr=TR, tv=TV,
            input_buffer_count=input_buffer_count)

    gathered = gathered[:R, 0].reshape(B, T)                  # input[b, t, target[b, t]]
    num = jnp.sum(-gathered * mask)
    den = jnp.sum(mask)
    return num / den


def _reference(inp, target):
    """Pure-JAX reference mirroring the PyTorch forward exactly."""
    B, T, V = inp.shape
    target = target[:, :T].astype(jnp.int32)
    counts = jnp.sum((target > 0).astype(jnp.int32), axis=1, keepdims=True)
    col = jnp.arange(T)[None, :]
    mask = (col <= counts).astype(jnp.float32)
    gathered = jnp.take_along_axis(inp, target[:, :, None], axis=2)[..., 0]
    out = -gathered.astype(jnp.float32) * mask
    return jnp.sum(out) / jnp.sum(mask)


if __name__ == "__main__":
    key = jax.random.PRNGKey(0)
    k1, k2, k3, k4, k5, k6, k7, k8 = jax.random.split(key, 8)

    # Case 1: small module-spec shapes (vocab < 128 corner, streaming path).
    B, T, V = 2, 8, 32
    lp1 = jax.nn.log_softmax(jax.random.normal(k1, (B, T, V), jnp.float32), axis=-1)
    tg1 = jax.random.randint(k2, (B, T), 0, V, dtype=jnp.int32)
    tg1 = tg1.at[0, 5:].set(0).at[1, 3:].set(0)               # zero-padded suffixes
    loss1 = jax.block_until_ready(language_model_criterion(lp1, tg1))
    ref1 = _reference(lp1, tg1)
    assert jnp.allclose(loss1, ref1, rtol=1e-5, atol=1e-5), (loss1, ref1)

    # Case 2: non-128-aligned vocab + tiny tiles -> multi-vocab-tile accumulation
    # and a partial edge block on the vocab axis (no wrapper padding).
    B2, T2, V2 = 2, 8, 300
    lp2 = jax.nn.log_softmax(jax.random.normal(k3, (B2, T2, V2), jnp.float32), axis=-1)
    tg2 = jax.random.randint(k4, (B2, T2), 0, V2, dtype=jnp.int32)
    tg2 = tg2.at[0, 6:].set(0).at[1, 2:].set(0)
    loss2 = jax.block_until_ready(
        language_model_criterion(lp2, tg2, tr_max=8, tv_max=128))
    ref2 = _reference(lp2, tg2)
    assert jnp.allclose(loss2, ref2, rtol=1e-5, atol=1e-5), (loss2, ref2)

    # Case 3: bf16 log-probs (input dtype preserved, halved HBM traffic).
    B3, T3, V3 = 2, 8, 300
    lp3 = jax.nn.log_softmax(jax.random.normal(k5, (B3, T3, V3), jnp.float32),
                             axis=-1).astype(jnp.bfloat16)
    tg3 = jax.random.randint(k6, (B3, T3), 0, V3, dtype=jnp.int32)
    tg3 = tg3.at[0, 4:].set(0).at[1, 7:].set(0)
    loss3 = jax.block_until_ready(language_model_criterion(lp3, tg3))
    ref3 = _reference(lp3, tg3)
    assert jnp.allclose(loss3, ref3, rtol=1e-4, atol=1e-4), (loss3, ref3)

    # Case 4: force the data-dependent DMA-gather path (normally V >= 8192).
    B4, T4, V4 = 2, 8, 640
    lp4 = jax.nn.log_softmax(jax.random.normal(k7, (B4, T4, V4), jnp.float32), axis=-1)
    tg4 = jax.random.randint(k8, (B4, T4), 0, V4, dtype=jnp.int32)
    tg4 = tg4.at[0, 5:].set(0).at[1, 6:].set(0)
    loss4 = jax.block_until_ready(
        language_model_criterion(lp4, tg4, use_gather=True))
    ref4 = _reference(lp4, tg4)
    assert jnp.allclose(loss4, ref4, rtol=1e-5, atol=1e-5), (loss4, ref4)

    print("KERNEL_OK")
</pallas_src>

<mosaic_0001>
module attributes {stable_mosaic.version = 11 : i64} {
  func.func @_stream_gather_kernel(%arg0: i32, %arg1: i32, %arg2: memref<8x128xf32, #tpu.memory_space<vmem>>, %arg3: memref<8x1xi32, #tpu.memory_space<vmem>>, %arg4: memref<8x1xf32, #tpu.memory_space<vmem>>, %arg5: memref<8x128xf32, #tpu.memory_space<vmem>>) attributes {dimension_semantics = [#tpu.dimension_semantics<parallel>, #tpu.dimension_semantics<arbitrary>], iteration_bounds = array<i64: 2, 1>, scalar_prefetch = 0 : i64, scratch_operands = 1 : i64, tpu.core_type = #tpu.core_type<tc>, window_params = [{transform_indices = @transform_0, window_bounds = array<i64: 8, 128>}, {transform_indices = @transform_1, window_bounds = array<i64: 8, 1>}, {transform_indices = @transform_2, window_bounds = array<i64: 8, 1>}]} {
    %c0_i32 = arith.constant 0 : i32
    %0 = arith.cmpi eq, %arg1, %c0_i32 : i32
    %1 = arith.extui %0 : i1 to i32
    %c0_i32_0 = arith.constant 0 : i32
    %2 = arith.cmpi ne, %1, %c0_i32_0 : i32
    scf.if %2 {
      %cst = arith.constant 0.000000e+00 : f32
      %19 = vector.broadcast %cst : f32 to vector<8x128xf32>
      %c0_11 = arith.constant 0 : index
      %c0_12 = arith.constant 0 : index
      %20 = vector.load %arg5[%c0_11, %c0_12] : memref<8x128xf32, #tpu.memory_space<vmem>>, vector<8x128xf32>
      tpu.vector_store %arg5[%c0_11, %c0_12], %19 {strides = array<i32>} : memref<8x128xf32, #tpu.memory_space<vmem>>, vector<8x128xf32>,
    } else {
    }
    %3 = tpu.iota {dimensions = array<i32: 1>} : vector<8x128xi32>
    %c0 = arith.constant 0 : index
    %c0_1 = arith.constant 0 : index
    %4 = vector.load %arg3[%c0, %c0_1] : memref<8x1xi32, #tpu.memory_space<vmem>>, vector<8x1xi32>
    %c128_i32 = arith.constant 128 : i32
    %5 = arith.muli %arg1, %c128_i32 : i32
    %6 = vector.broadcast %5 : i32 to vector<8x1xi32>
    %7 = arith.subi %4, %6 : vector<8x1xi32>
    %8 = vector.broadcast %7 : vector<8x1xi32> to vector<8x128xi32>
    %9 = arith.subi %8, %3 : vector<8x128xi32>
    %c0_2 = arith.constant 0 : index
    %c0_3 = arith.constant 0 : index
    %10 = vector.load %arg2[%c0_2, %c0_3] : memref<8x128xf32, #tpu.memory_space<vmem>>, vector<8x128xf32>
    %c0_i32_4 = arith.constant 0 : i32
    %11 = vector.broadcast %c0_i32_4 : i32 to vector<8x128xi32>
    %12 = arith.cmpi eq, %9, %11 : vector<8x128xi32>
    %c0_5 = arith.constant 0 : index
    %c0_6 = arith.constant 0 : index
    %13 = vector.load %arg5[%c0_5, %c0_6] : memref<8x128xf32, #tpu.memory_space<vmem>>, vector<8x128xf32>
    %14 = arith.select %12, %10, %13 : vector<8x128xi1>, vector<8x128xf32>
    %c0_7 = arith.constant 0 : index
    %c0_8 = arith.constant 0 : index
    %15 = vector.load %arg5[%c0_7, %c0_8] : memref<8x128xf32, #tpu.memory_space<vmem>>, vector<8x128xf32>
    tpu.vector_store %arg5[%c0_7, %c0_8], %14 {strides = array<i32>} : memref<8x128xf32, #tpu.memory_space<vmem>>, vector<8x128xf32>,
    %c0_i32_9 = arith.constant 0 : i32
    %16 = arith.cmpi eq, %arg1, %c0_i32_9 : i32
    %17 = arith.extui %16 : i1 to i32
    %c0_i32_10 = arith.constant 0 : i32
    %18 = arith.cmpi ne, %17, %c0_i32_10 : i32
    scf.if %18 {
      %c0_11 = arith.constant 0 : index
      %c0_12 = arith.constant 0 : index
      %19 = vector.load %arg5[%c0_11, %c0_12] : memref<8x128xf32, #tpu.memory_space<vmem>>, vector<8x128xf32>
      %cst = arith.constant dense<0.000000e+00> : vector<8xf32>
      %20 = vector.multi_reduction <add>, %19, %cst [1] : vector<8x128xf32> to vector<8xf32>
      %21 = vector.shape_cast %20 : vector<8xf32> to vector<8x1xf32>
      %c0_13 = arith.constant 0 : index
      %c0_14 = arith.constant 0 : index
      %22 = vector.load %arg4[%c0_13, %c0_14] : memref<8x1xf32, #tpu.memory_space<vmem>>, vector<8x1xf32>
      tpu.vector_store %arg4[%c0_13, %c0_14], %21 {strides = array<i32>} : memref<8x1xf32, #tpu.memory_space<vmem>>, vector<8x1xf32>,
    } else {
    }
    return
  }
  func.func @transform_0(%arg0: i32, %arg1: i32) -> (i32, i32) {
    %c0_i32 = arith.constant 0 : i32
    return %arg0, %arg1 : i32, i32
  }
  func.func @transform_1(%arg0: i32, %arg1: i32) -> (i32, i32) {
    %c0_i32 = arith.constant 0 : i32
    %c0_i32_0 = arith.constant 0 : i32
    return %arg0, %c0_i32 : i32, i32
  }
  func.func @transform_2(%arg0: i32, %arg1: i32) -> (i32, i32) {
    %c0_i32 = arith.constant 0 : i32
    %c0_i32_0 = arith.constant 0 : i32
    return %arg0, %c0_i32 : i32, i32
  }
}

</mosaic_0001>

<bundles_post_ra>
// kernel: tpu_custom_call.1
= control target key start
LH: loop header
LB: loop body
LE: loop exit
PB: predicated region body
PF: predicated region fallthrough
CT: control target
= control target key end

     0   :  { %s359_s9 = smov 0   ;;  %s361_s10 = smov 0   ;;  %s392_s0 = inlined_call_operand.vmem [shape: f32[16,128], index: 0, kind: input, shape index: {}]   ;;  %s393_s1 = inlined_call_operand.vmem [shape: s32[16,1], index: 1, kind: input, shape index: {}]   ;;  %s394_s2 = inlined_call_operand.vmem [shape: f32[16,1], index: 2, kind: output, shape index: {}]  }
   0x1   :  { %s363_s11 = smov 0  }
   0x2 LB: > { %s24_s12 = sadd.s32 1, %s337_s10  ;;  %p287_p0 = scmp.ge.s32.totalorder %s341_s11, 1  ;;  %s341_s11 = sphi %s363_s11, %s12_s11   ;;  %s337_s10 = sphi %s361_s10, %s396_s10   ;;  %s333_s9 = sphi %s359_s9, %s395_s9  }
   0x3   : > { %p26_p1 = scmp.ge.s32.totalorder %s24_s12, 2  ;;  %p137_p2 = scmp.lt.s32.totalorder %s341_s11, 3 }
   0x5   : > { %s398_s12 = smov (%p26_p1, %s24_s12), 0  ;;  %p138_p3 = pnand %p287_p0, %p137_p2 }
   0x6   : > { %p164_p4 = scmp.lt.s32.totalorder (!%p138_p3), %s333_s9, 1 }
   0x7   : > { %141 = sbr.rel (%p138_p3) target bundleno = 283 (0x11b), region = 28 }
   0xc   : > { %v343_v0 = vmov 0   ;;  %s400_s9 = smov (!%p164_p4, %s333_s9), 1  ;;  %v184_v2 = vlaneseq  ;;  %vm205_vm1 = vcmask 7168  }
   0xd   : > { %318 = vset.pattern.permute.xlu0 %v343_v0  ;;  %s288_s13 = sshll.u32 %s400_s9, 3 }
   0xe   : > { %s174_s16 = scalar_lea.vmem %s393_s1, %s288_s13  ;;  %v185_v3 = vand.u32 127, %v184_v2  ;;  %s170_s19 = scalar_lea.vmem %s392_s0, %s288_s13 }
   0xf   : > { %v186_v1 = vld [vmem:[%s174_s16] sm:$0xff]  ;;  %s178_s22 = scalar_lea.vmem %s394_s2, %s288_s13 }
  0x10   : > { %191 = vperm.xlu0 %318, %v186_v1   ;;  %v194_v6 = vld [vmem:[%s170_s19] sm:$0xff] }
  0x8b   : > { %v192_v4 = vpop.permute.xlu0 %191 }
  0x8c   : > { %v193_v5 = vsub.s32 %v192_v4, %v185_v3 }
  0x8e   : > { %vm195_vm0 = vcmp.eq.s32.totalorder %v193_v5, 0 }
  0x8f   : > { %v197_v7 = vsel %vm195_vm0, %v194_v6, 0.0 }
  0x90   : > { %203 = vadd.xlane.f32.xlu0 %v197_v7 }
 0x119   : > { %v204_v8 = vpop.xlane.xlu0 %203 }
 0x11a   : > { %206 = vst.msk [vmem:[%s178_s22] sm:$0xff] %vm205_vm1, %v204_v8 }
 0x11b PF: > { %s12_s11 = sadd.s32 1, %s341_s11   ;;  %s395_s9 = smov %s337_s10 }
 0x11c   : > { %p9_p5 = scmp.ge.s32.totalorder %s12_s11, 4   ;;  %s396_s10 = smov %s398_s12 }
 0x11e   :  { %11 = sbr.rel (!%p9_p5) target bundleno = 2 (0x2), region = 69 }

</bundles_post_ra>
